<compile_context>
chip_gen: v7x
topology: tpu7x:2x2x1
jax: 0.10.0
libtpu: 0.0.40
codegen_flags: <defaults>
</compile_context>

<pallas_src>
import jax
import jax.numpy as jnp
import numpy as np
from jax import lax
from jax.experimental import pallas as pl
from jax.experimental.pallas import tpu as pltpu

# ----------------------------- configuration -------------------------------
BATCH = 2
HORIZON = 8
OBS_DIM = 6
ACT_DIM = 2
TRANS_DIM = OBS_DIM + ACT_DIM          # 8
HIDDEN = 32                            # synthetic denoiser width
N_TIMESTEPS = 8                        # argus.diffusion_steps
CLIP_VAL = 0.99999                     # clip_denoised clamp from the module
COEF_STRIDE = 8                        # scalars per step in the SMEM table


# --------------------------- diffusion schedule -----------------------------
def cosine_beta_schedule(timesteps, s=0.008):
    steps = timesteps + 1
    x = np.linspace(0, steps, steps)
    alphas_cumprod = np.cos(((x / steps) + s) / (1 + s) * np.pi * 0.5) ** 2
    alphas_cumprod = alphas_cumprod / alphas_cumprod[0]
    betas = 1.0 - (alphas_cumprod[1:] / alphas_cumprod[:-1])
    return np.clip(betas, 0.0, 0.999).astype(np.float32)


def make_schedule(n_timesteps):
    betas = cosine_beta_schedule(n_timesteps)
    alphas = 1.0 - betas
    alphas_cumprod = np.cumprod(alphas, axis=0)
    alphas_cumprod_prev = np.concatenate([np.ones(1, np.float32),
                                          alphas_cumprod[:-1]])
    sched = dict(
        betas=betas,
        alphas_cumprod=alphas_cumprod,
        sqrt_recip_alphas_cumprod=np.sqrt(1.0 / alphas_cumprod),
        sqrt_recipm1_alphas_cumprod=np.sqrt(1.0 / alphas_cumprod - 1.0),
        posterior_variance=betas * (1.0 - alphas_cumprod_prev)
        / (1.0 - alphas_cumprod),
        posterior_mean_coef1=betas * np.sqrt(alphas_cumprod_prev)
        / (1.0 - alphas_cumprod),
        posterior_mean_coef2=(1.0 - alphas_cumprod_prev) * np.sqrt(alphas)
        / (1.0 - alphas_cumprod),
    )
    sched["posterior_log_variance_clipped"] = np.log(
        np.clip(sched["posterior_variance"], 1e-20, None))
    return {k: jnp.asarray(v, jnp.float32) for k, v in sched.items()}


# ------------------------------ Pallas kernel -------------------------------
def fused_p_sample_loop_kernel(coefs_ref, x0_ref, noise_ref, b1t_ref,
                               cvals_ref, w1_ref, w2_ref, b2_ref, out_ref):
    """Whole DDPM reverse loop in one invocation; carry x stays in vregs."""
    R, T = out_ref.shape

    # ---- hoisted constants: loaded / computed once, reused every step ----
    w1 = w1_ref[...]          # (T, HID)
    w2 = w2_ref[...]          # (HID, T)
    b2 = b2_ref[...]          # (1, T)
    cvals = cvals_ref[...]    # (R, T) cond values at rows 0..B-1, cols 0..OBS_DIM-1
    row = lax.broadcasted_iota(jnp.int32, (R, T), 0)
    col = lax.broadcasted_iota(jnp.int32, (R, T), 1)
    cond_mask = (row < BATCH) & (col < OBS_DIM)   # horizon-0 rows sit at the top

    def step(s, x):
        # -- synthetic denoiser: eps = relu(x @ W1 + (b1 + temb_t)) @ W2 + b2
        # TODO(synk): stands in for the external self.model denoiser.
        b1_eff = b1t_ref[pl.ds(s, 1), :]                       # (1, HID)
        h = jnp.dot(x, w1, preferred_element_type=jnp.float32) + b1_eff
        h = jnp.maximum(h, 0.0)
        eps = jnp.dot(h, w2, preferred_element_type=jnp.float32) + b2

        # -- per-step scalar schedule coefficients from the 1-D SMEM table
        base = s * COEF_STRIDE
        sra = coefs_ref[base + 0]     # sqrt_recip_alphas_cumprod[t]
        srm1 = coefs_ref[base + 1]    # sqrt_recipm1_alphas_cumprod[t]
        c1 = coefs_ref[base + 2]      # posterior_mean_coef1[t]
        c2 = coefs_ref[base + 3]      # posterior_mean_coef2[t]
        sigma = coefs_ref[base + 4]   # nonzero_mask * exp(0.5 * log_var)

        noise = noise_ref[s]          # (R, T) this step's Gaussian noise

        # -- predict_start_from_noise (predict_epsilon=True) + clip_denoised
        x_recon = jnp.clip(sra * x - srm1 * eps, -CLIP_VAL, CLIP_VAL)
        # -- q_posterior mean + reparameterized sample
        x_next = c1 * x_recon + c2 * x + sigma * noise
        # -- apply_condition: x[:, 0, :obs_dim] = cond  (single select)
        return jnp.where(cond_mask, cvals, x_next)

    x = lax.fori_loop(0, N_TIMESTEPS, step, x0_ref[...], unroll=True)
    out_ref[...] = x


def fused_p_sample_loop_call(coefs, x0_flat, noises_flat, b1t, cvals,
                             w1, w2, b2):
    R, T = x0_flat.shape
    vmem = pl.BlockSpec(memory_space=pltpu.MemorySpace.VMEM)
    return pl.pallas_call(
        fused_p_sample_loop_kernel,
        out_shape=jax.ShapeDtypeStruct((R, T), jnp.float32),
        in_specs=[
            pl.BlockSpec(memory_space=pltpu.MemorySpace.SMEM),  # coefs (NT*8,)
            vmem,   # x0_flat (R, T)          -- aliased to the output
            vmem,   # noises  (NT, R, T)      -- fully resident
            vmem,   # b1+temb (NT, HID)       -- fully resident
            vmem,   # cond values (R, T)
            vmem,   # w1 (T, HID)
            vmem,   # w2 (HID, T)
            vmem,   # b2 (1, T)
        ],
        out_specs=vmem,
        input_output_aliases={1: 0},   # x0_flat buffer is the output buffer
    )(coefs, x0_flat, noises_flat, b1t, cvals, w1, w2, b2)


# ------------------------------ glue / wrapper ------------------------------
def time_embedding(t, dim):
    half = dim // 2
    freqs = jnp.exp(-jnp.log(10000.0) * jnp.arange(half, dtype=jnp.float32)
                    / half)
    arg = t.astype(jnp.float32) * freqs
    return jnp.concatenate([jnp.sin(arg), jnp.cos(arg)], axis=-1)  # (dim,)


def diffusion_forward(cond, x_init, noises, sched, params):
    """forward(cond, data_shape, ddim_sample=False): DDPM sampling loop."""
    w1, b1, w2, b2 = params
    B, H, T = x_init.shape
    R = B * H

    # initial apply_condition, then (B,H,T) -> (H,B,T) -> (R,T) so horizon-0
    # rows are contiguous at the top of the flattened slab
    x0 = x_init.at[:, 0, :OBS_DIM].set(cond)
    x0_flat = jnp.transpose(x0, (1, 0, 2)).reshape(R, T)
    noises_flat = jnp.transpose(noises, (0, 2, 1, 3)).reshape(N_TIMESTEPS, R, T)

    # per-loop-step scalar table (step s corresponds to timestep t = NT-1-s),
    # flattened to 1-D so SMEM padding stays minimal as N_TIMESTEPS grows
    ts = jnp.arange(N_TIMESTEPS - 1, -1, -1)
    sigma = ((ts != 0).astype(jnp.float32)
             * jnp.exp(0.5 * sched["posterior_log_variance_clipped"][ts]))
    zeros = jnp.zeros_like(sigma)
    coefs = jnp.stack([
        sched["sqrt_recip_alphas_cumprod"][ts],
        sched["sqrt_recipm1_alphas_cumprod"][ts],
        sched["posterior_mean_coef1"][ts],
        sched["posterior_mean_coef2"][ts],
        sigma, zeros, zeros, zeros,
    ], axis=1).reshape(-1).astype(jnp.float32)          # (NT * COEF_STRIDE,)

    temb = jax.vmap(lambda t: time_embedding(t, HIDDEN))(ts)   # (NT, HIDDEN)
    b1t = (b1 + temb).astype(jnp.float32)                      # (NT, HIDDEN)

    # conditioning values (x[:, 0, :obs_dim] = cond) in the (H,B,T) flat layout
    cvals = jnp.zeros((R, T), jnp.float32).at[0:B, 0:OBS_DIM].set(cond)

    out_flat = fused_p_sample_loop_call(coefs, x0_flat, noises_flat, b1t,
                                        cvals, w1, w2, b2)
    return jnp.transpose(out_flat.reshape(H, B, T), (1, 0, 2))


# pure-JAX reference of the same math for verification
def reference_loop(cond, x_init, noises, sched, params):
    w1, b1, w2, b2 = params
    x = x_init.at[:, 0, :OBS_DIM].set(cond)
    for s in range(N_TIMESTEPS):
        i = N_TIMESTEPS - 1 - s
        temb = time_embedding(jnp.asarray(i), HIDDEN)[None, None, :]
        h = jnp.maximum(jnp.einsum("bht,td->bhd", x, w1) + b1 + temb, 0.0)
        eps = jnp.einsum("bhd,dt->bht", h, w2) + b2
        sra = sched["sqrt_recip_alphas_cumprod"][i]
        srm1 = sched["sqrt_recipm1_alphas_cumprod"][i]
        x_recon = jnp.clip(sra * x - srm1 * eps, -CLIP_VAL, CLIP_VAL)
        mean = (sched["posterior_mean_coef1"][i] * x_recon
                + sched["posterior_mean_coef2"][i] * x)
        logv = sched["posterior_log_variance_clipped"][i]
        nzm = 0.0 if i == 0 else 1.0
        x = mean + nzm * jnp.exp(0.5 * logv) * noises[s]
        x = x.at[:, 0, :OBS_DIM].set(cond)
    return x


# ---------------------------------- main ------------------------------------
if __name__ == "__main__":
    key = jax.random.PRNGKey(0)
    k_cond, k_x, k_noise, k_w1, k_w2 = jax.random.split(key, 5)

    # deterministic synthetic denoiser parameters
    w1 = (jax.random.normal(k_w1, (TRANS_DIM, HIDDEN), jnp.float32)
          * (1.0 / np.sqrt(TRANS_DIM)))
    b1 = jnp.zeros((1, HIDDEN), jnp.float32)
    w2 = (jax.random.normal(k_w2, (HIDDEN, TRANS_DIM), jnp.float32)
          * (1.0 / np.sqrt(HIDDEN)))
    b2 = jnp.zeros((1, TRANS_DIM), jnp.float32)
    params = (w1, b1, w2, b2)

    sched = make_schedule(N_TIMESTEPS)

    cond = jax.random.normal(k_cond, (BATCH, OBS_DIM), jnp.float32)
    data_shape = (BATCH, HORIZON, TRANS_DIM)
    x_init = jax.random.normal(k_x, data_shape, jnp.float32)
    noises = jax.random.normal(k_noise, (N_TIMESTEPS,) + data_shape,
                               jnp.float32)

    run = jax.jit(lambda c, x0, ns: diffusion_forward(c, x0, ns, sched,
                                                      params))
    out = run(cond, x_init, noises)
    out = jax.block_until_ready(out)

    ref = reference_loop(cond, x_init, noises, sched, params)
    np.testing.assert_allclose(np.asarray(out), np.asarray(ref),
                               rtol=1e-4, atol=1e-4)

    assert out.shape == data_shape
    print("KERNEL_OK")
</pallas_src>

<mosaic_0001>
module attributes {stable_mosaic.version = 11 : i64} {
  func.func @fused_p_sample_loop_kernel(%arg0: memref<64xf32, #tpu.memory_space<smem>>, %arg1: memref<16x8xf32, #tpu.memory_space<vmem>>, %arg2: memref<8x16x8xf32, #tpu.memory_space<vmem>>, %arg3: memref<8x32xf32, #tpu.memory_space<vmem>>, %arg4: memref<16x8xf32, #tpu.memory_space<vmem>>, %arg5: memref<8x32xf32, #tpu.memory_space<vmem>>, %arg6: memref<32x8xf32, #tpu.memory_space<vmem>>, %arg7: memref<1x8xf32, #tpu.memory_space<vmem>>, %arg8: memref<16x8xf32, #tpu.memory_space<vmem>>) attributes {dimension_semantics = [], scalar_prefetch = 0 : i64, scratch_operands = 0 : i64, tpu.core_type = #tpu.core_type<tc>} {
    %c0 = arith.constant 0 : index
    %c0_0 = arith.constant 0 : index
    %0 = vector.load %arg5[%c0, %c0_0] : memref<8x32xf32, #tpu.memory_space<vmem>>, vector<8x32xf32>
    %c0_1 = arith.constant 0 : index
    %c0_2 = arith.constant 0 : index
    %1 = vector.load %arg6[%c0_1, %c0_2] : memref<32x8xf32, #tpu.memory_space<vmem>>, vector<32x8xf32>
    %c0_3 = arith.constant 0 : index
    %c0_4 = arith.constant 0 : index
    %2 = vector.load %arg7[%c0_3, %c0_4] : memref<1x8xf32, #tpu.memory_space<vmem>>, vector<1x8xf32>
    %c0_5 = arith.constant 0 : index
    %c0_6 = arith.constant 0 : index
    %3 = vector.load %arg4[%c0_5, %c0_6] : memref<16x8xf32, #tpu.memory_space<vmem>>, vector<16x8xf32>
    %4 = tpu.iota {dimensions = array<i32: 0>} : vector<16x8xi32>
    %5 = tpu.iota {dimensions = array<i32: 1>} : vector<16x8xi32>
    %c2_i32 = arith.constant 2 : i32
    %6 = vector.broadcast %c2_i32 : i32 to vector<16x8xi32>
    %7 = arith.cmpi slt, %4, %6 : vector<16x8xi32>
    %c6_i32 = arith.constant 6 : i32
    %8 = vector.broadcast %c6_i32 : i32 to vector<16x8xi32>
    %9 = arith.cmpi slt, %5, %8 : vector<16x8xi32>
    %10 = arith.andi %7, %9 : vector<16x8xi1>
    %c0_7 = arith.constant 0 : index
    %c0_8 = arith.constant 0 : index
    %11 = vector.load %arg1[%c0_7, %c0_8] : memref<16x8xf32, #tpu.memory_space<vmem>>, vector<16x8xf32>
    %c0_i32 = arith.constant 0 : i32
    %12 = arith.index_cast %c0_i32 : i32 to index
    %c0_9 = arith.constant 0 : index
    %13 = vector.load %arg3[%12, %c0_9] : memref<8x32xf32, #tpu.memory_space<vmem>>, vector<1x32xf32>
    %cst = arith.constant dense<0.000000e+00> : vector<16x32xf32>
    %14 = tpu.matmul %11, %0, %cst {dimension_numbers = #tpu.dot_dimension_numbers<[1], [0], [0], [1], [0, 0, 1, 1], [], []>} : vector<16x8xf32>, vector<8x32xf32>, vector<16x32xf32> -> vector<16x32xf32>
    %15 = vector.broadcast %13 : vector<1x32xf32> to vector<16x32xf32>
    %16 = arith.addf %14, %15 : vector<16x32xf32>
    %cst_10 = arith.constant 0.000000e+00 : f32
    %17 = vector.broadcast %cst_10 : f32 to vector<16x32xf32>
    %18 = arith.maximumf %16, %17 : vector<16x32xf32>
    %cst_11 = arith.constant dense<0.000000e+00> : vector<16x8xf32>
    %19 = tpu.matmul %18, %1, %cst_11 {dimension_numbers = #tpu.dot_dimension_numbers<[1], [0], [0], [1], [0, 0, 1, 1], [], []>} : vector<16x32xf32>, vector<32x8xf32>, vector<16x8xf32> -> vector<16x8xf32>
    %20 = vector.broadcast %2 : vector<1x8xf32> to vector<16x8xf32>
    %21 = arith.addf %19, %20 : vector<16x8xf32>
    %c8_i32 = arith.constant 8 : i32
    %22 = arith.muli %c0_i32, %c8_i32 : i32
    %c0_i32_12 = arith.constant 0 : i32
    %23 = arith.addi %22, %c0_i32_12 : i32
    %24 = arith.index_cast %23 : i32 to index
    %25 = memref.load %arg0[%24] : memref<64xf32, #tpu.memory_space<smem>>
    %c1_i32 = arith.constant 1 : i32
    %26 = arith.addi %22, %c1_i32 : i32
    %27 = arith.index_cast %26 : i32 to index
    %28 = memref.load %arg0[%27] : memref<64xf32, #tpu.memory_space<smem>>
    %c2_i32_13 = arith.constant 2 : i32
    %29 = arith.addi %22, %c2_i32_13 : i32
    %30 = arith.index_cast %29 : i32 to index
    %31 = memref.load %arg0[%30] : memref<64xf32, #tpu.memory_space<smem>>
    %c3_i32 = arith.constant 3 : i32
    %32 = arith.addi %22, %c3_i32 : i32
    %33 = arith.index_cast %32 : i32 to index
    %34 = memref.load %arg0[%33] : memref<64xf32, #tpu.memory_space<smem>>
    %c4_i32 = arith.constant 4 : i32
    %35 = arith.addi %22, %c4_i32 : i32
    %36 = arith.index_cast %35 : i32 to index
    %37 = memref.load %arg0[%36] : memref<64xf32, #tpu.memory_space<smem>>
    %38 = arith.index_cast %c0_i32 : i32 to index
    %c0_14 = arith.constant 0 : index
    %c0_15 = arith.constant 0 : index
    %39 = vector.load %arg2[%38, %c0_14, %c0_15] : memref<8x16x8xf32, #tpu.memory_space<vmem>>, vector<1x16x8xf32>
    %40 = vector.shape_cast %39 : vector<1x16x8xf32> to vector<16x8xf32>
    %41 = vector.broadcast %25 : f32 to vector<16x8xf32>
    %42 = arith.mulf %41, %11 : vector<16x8xf32>
    %43 = vector.broadcast %28 : f32 to vector<16x8xf32>
    %44 = arith.mulf %43, %21 : vector<16x8xf32>
    %45 = arith.subf %42, %44 : vector<16x8xf32>
    %cst_16 = arith.constant -0.999989986 : f32
    %cst_17 = arith.constant 0.999989986 : f32
    %46 = vector.broadcast %cst_16 : f32 to vector<16x8xf32>
    %47 = arith.maximumf %46, %45 : vector<16x8xf32>
    %48 = vector.broadcast %cst_17 : f32 to vector<16x8xf32>
    %49 = arith.minimumf %48, %47 : vector<16x8xf32>
    %50 = vector.broadcast %31 : f32 to vector<16x8xf32>
    %51 = arith.mulf %50, %49 : vector<16x8xf32>
    %52 = vector.broadcast %34 : f32 to vector<16x8xf32>
    %53 = arith.mulf %52, %11 : vector<16x8xf32>
    %54 = arith.addf %51, %53 : vector<16x8xf32>
    %55 = vector.broadcast %37 : f32 to vector<16x8xf32>
    %56 = arith.mulf %55, %40 : vector<16x8xf32>
    %57 = arith.addf %54, %56 : vector<16x8xf32>
    %58 = arith.select %10, %3, %57 : vector<16x8xi1>, vector<16x8xf32>
    %c1_i32_18 = arith.constant 1 : i32
    %59 = arith.index_cast %c1_i32_18 : i32 to index
    %c0_19 = arith.constant 0 : index
    %60 = vector.load %arg3[%59, %c0_19] : memref<8x32xf32, #tpu.memory_space<vmem>>, vector<1x32xf32>
    %cst_20 = arith.constant dense<0.000000e+00> : vector<16x32xf32>
    %61 = tpu.matmul %58, %0, %cst_20 {dimension_numbers = #tpu.dot_dimension_numbers<[1], [0], [0], [1], [0, 0, 1, 1], [], []>} : vector<16x8xf32>, vector<8x32xf32>, vector<16x32xf32> -> vector<16x32xf32>
    %62 = vector.broadcast %60 : vector<1x32xf32> to vector<16x32xf32>
    %63 = arith.addf %61, %62 : vector<16x32xf32>
    %cst_21 = arith.constant 0.000000e+00 : f32
    %64 = vector.broadcast %cst_21 : f32 to vector<16x32xf32>
    %65 = arith.maximumf %63, %64 : vector<16x32xf32>
    %cst_22 = arith.constant dense<0.000000e+00> : vector<16x8xf32>
    %66 = tpu.matmul %65, %1, %cst_22 {dimension_numbers = #tpu.dot_dimension_numbers<[1], [0], [0], [1], [0, 0, 1, 1], [], []>} : vector<16x32xf32>, vector<32x8xf32>, vector<16x8xf32> -> vector<16x8xf32>
    %67 = vector.broadcast %2 : vector<1x8xf32> to vector<16x8xf32>
    %68 = arith.addf %66, %67 : vector<16x8xf32>
    %c8_i32_23 = arith.constant 8 : i32
    %69 = arith.muli %c1_i32_18, %c8_i32_23 : i32
    %c0_i32_24 = arith.constant 0 : i32
    %70 = arith.addi %69, %c0_i32_24 : i32
    %71 = arith.index_cast %70 : i32 to index
    %72 = memref.load %arg0[%71] : memref<64xf32, #tpu.memory_space<smem>>
    %c1_i32_25 = arith.constant 1 : i32
    %73 = arith.addi %69, %c1_i32_25 : i32
    %74 = arith.index_cast %73 : i32 to index
    %75 = memref.load %arg0[%74] : memref<64xf32, #tpu.memory_space<smem>>
    %c2_i32_26 = arith.constant 2 : i32
    %76 = arith.addi %69, %c2_i32_26 : i32
    %77 = arith.index_cast %76 : i32 to index
    %78 = memref.load %arg0[%77] : memref<64xf32, #tpu.memory_space<smem>>
    %c3_i32_27 = arith.constant 3 : i32
    %79 = arith.addi %69, %c3_i32_27 : i32
    %80 = arith.index_cast %79 : i32 to index
    %81 = memref.load %arg0[%80] : memref<64xf32, #tpu.memory_space<smem>>
    %c4_i32_28 = arith.constant 4 : i32
    %82 = arith.addi %69, %c4_i32_28 : i32
    %83 = arith.index_cast %82 : i32 to index
    %84 = memref.load %arg0[%83] : memref<64xf32, #tpu.memory_space<smem>>
    %85 = arith.index_cast %c1_i32_18 : i32 to index
    %c0_29 = arith.constant 0 : index
    %c0_30 = arith.constant 0 : index
    %86 = vector.load %arg2[%85, %c0_29, %c0_30] : memref<8x16x8xf32, #tpu.memory_space<vmem>>, vector<1x16x8xf32>
    %87 = vector.shape_cast %86 : vector<1x16x8xf32> to vector<16x8xf32>
    %88 = vector.broadcast %72 : f32 to vector<16x8xf32>
    %89 = arith.mulf %88, %58 : vector<16x8xf32>
    %90 = vector.broadcast %75 : f32 to vector<16x8xf32>
    %91 = arith.mulf %90, %68 : vector<16x8xf32>
    %92 = arith.subf %89, %91 : vector<16x8xf32>
    %cst_31 = arith.constant -0.999989986 : f32
    %cst_32 = arith.constant 0.999989986 : f32
    %93 = vector.broadcast %cst_31 : f32 to vector<16x8xf32>
    %94 = arith.maximumf %93, %92 : vector<16x8xf32>
    %95 = vector.broadcast %cst_32 : f32 to vector<16x8xf32>
    %96 = arith.minimumf %95, %94 : vector<16x8xf32>
    %97 = vector.broadcast %78 : f32 to vector<16x8xf32>
    %98 = arith.mulf %97, %96 : vector<16x8xf32>
    %99 = vector.broadcast %81 : f32 to vector<16x8xf32>
    %100 = arith.mulf %99, %58 : vector<16x8xf32>
    %101 = arith.addf %98, %100 : vector<16x8xf32>
    %102 = vector.broadcast %84 : f32 to vector<16x8xf32>
    %103 = arith.mulf %102, %87 : vector<16x8xf32>
    %104 = arith.addf %101, %103 : vector<16x8xf32>
    %105 = arith.select %10, %3, %104 : vector<16x8xi1>, vector<16x8xf32>
    %c2_i32_33 = arith.constant 2 : i32
    %106 = arith.index_cast %c2_i32_33 : i32 to index
    %c0_34 = arith.constant 0 : index
    %107 = vector.load %arg3[%106, %c0_34] : memref<8x32xf32, #tpu.memory_space<vmem>>, vector<1x32xf32>
    %cst_35 = arith.constant dense<0.000000e+00> : vector<16x32xf32>
    %108 = tpu.matmul %105, %0, %cst_35 {dimension_numbers = #tpu.dot_dimension_numbers<[1], [0], [0], [1], [0, 0, 1, 1], [], []>} : vector<16x8xf32>, vector<8x32xf32>, vector<16x32xf32> -> vector<16x32xf32>
    %109 = vector.broadcast %107 : vector<1x32xf32> to vector<16x32xf32>
    %110 = arith.addf %108, %109 : vector<16x32xf32>
    %cst_36 = arith.constant 0.000000e+00 : f32
    %111 = vector.broadcast %cst_36 : f32 to vector<16x32xf32>
    %112 = arith.maximumf %110, %111 : vector<16x32xf32>
    %cst_37 = arith.constant dense<0.000000e+00> : vector<16x8xf32>
    %113 = tpu.matmul %112, %1, %cst_37 {dimension_numbers = #tpu.dot_dimension_numbers<[1], [0], [0], [1], [0, 0, 1, 1], [], []>} : vector<16x32xf32>, vector<32x8xf32>, vector<16x8xf32> -> vector<16x8xf32>
    %114 = vector.broadcast %2 : vector<1x8xf32> to vector<16x8xf32>
    %115 = arith.addf %113, %114 : vector<16x8xf32>
    %c8_i32_38 = arith.constant 8 : i32
    %116 = arith.muli %c2_i32_33, %c8_i32_38 : i32
    %c0_i32_39 = arith.constant 0 : i32
    %117 = arith.addi %116, %c0_i32_39 : i32
    %118 = arith.index_cast %117 : i32 to index
    %119 = memref.load %arg0[%118] : memref<64xf32, #tpu.memory_space<smem>>
    %c1_i32_40 = arith.constant 1 : i32
    %120 = arith.addi %116, %c1_i32_40 : i32
    %121 = arith.index_cast %120 : i32 to index
    %122 = memref.load %arg0[%121] : memref<64xf32, #tpu.memory_space<smem>>
    %c2_i32_41 = arith.constant 2 : i32
    %123 = arith.addi %116, %c2_i32_41 : i32
    %124 = arith.index_cast %123 : i32 to index
    %125 = memref.load %arg0[%124] : memref<64xf32, #tpu.memory_space<smem>>
    %c3_i32_42 = arith.constant 3 : i32
    %126 = arith.addi %116, %c3_i32_42 : i32
    %127 = arith.index_cast %126 : i32 to index
    %128 = memref.load %arg0[%127] : memref<64xf32, #tpu.memory_space<smem>>
    %c4_i32_43 = arith.constant 4 : i32
    %129 = arith.addi %116, %c4_i32_43 : i32
    %130 = arith.index_cast %129 : i32 to index
    %131 = memref.load %arg0[%130] : memref<64xf32, #tpu.memory_space<smem>>
    %132 = arith.index_cast %c2_i32_33 : i32 to index
    %c0_44 = arith.constant 0 : index
    %c0_45 = arith.constant 0 : index
    %133 = vector.load %arg2[%132, %c0_44, %c0_45] : memref<8x16x8xf32, #tpu.memory_space<vmem>>, vector<1x16x8xf32>
    %134 = vector.shape_cast %133 : vector<1x16x8xf32> to vector<16x8xf32>
    %135 = vector.broadcast %119 : f32 to vector<16x8xf32>
    %136 = arith.mulf %135, %105 : vector<16x8xf32>
    %137 = vector.broadcast %122 : f32 to vector<16x8xf32>
    %138 = arith.mulf %137, %115 : vector<16x8xf32>
    %139 = arith.subf %136, %138 : vector<16x8xf32>
    %cst_46 = arith.constant -0.999989986 : f32
    %cst_47 = arith.constant 0.999989986 : f32
    %140 = vector.broadcast %cst_46 : f32 to vector<16x8xf32>
    %141 = arith.maximumf %140, %139 : vector<16x8xf32>
    %142 = vector.broadcast %cst_47 : f32 to vector<16x8xf32>
    %143 = arith.minimumf %142, %141 : vector<16x8xf32>
    %144 = vector.broadcast %125 : f32 to vector<16x8xf32>
    %145 = arith.mulf %144, %143 : vector<16x8xf32>
    %146 = vector.broadcast %128 : f32 to vector<16x8xf32>
    %147 = arith.mulf %146, %105 : vector<16x8xf32>
    %148 = arith.addf %145, %147 : vector<16x8xf32>
    %149 = vector.broadcast %131 : f32 to vector<16x8xf32>
    %150 = arith.mulf %149, %134 : vector<16x8xf32>
    %151 = arith.addf %148, %150 : vector<16x8xf32>
    %152 = arith.select %10, %3, %151 : vector<16x8xi1>, vector<16x8xf32>
    %c3_i32_48 = arith.constant 3 : i32
    %153 = arith.index_cast %c3_i32_48 : i32 to index
    %c0_49 = arith.constant 0 : index
    %154 = vector.load %arg3[%153, %c0_49] : memref<8x32xf32, #tpu.memory_space<vmem>>, vector<1x32xf32>
    %cst_50 = arith.constant dense<0.000000e+00> : vector<16x32xf32>
    %155 = tpu.matmul %152, %0, %cst_50 {dimension_numbers = #tpu.dot_dimension_numbers<[1], [0], [0], [1], [0, 0, 1, 1], [], []>} : vector<16x8xf32>, vector<8x32xf32>, vector<16x32xf32> -> vector<16x32xf32>
    %156 = vector.broadcast %154 : vector<1x32xf32> to vector<16x32xf32>
    %157 = arith.addf %155, %156 : vector<16x32xf32>
    %cst_51 = arith.constant 0.000000e+00 : f32
    %158 = vector.broadcast %cst_51 : f32 to vector<16x32xf32>
    %159 = arith.maximumf %157, %158 : vector<16x32xf32>
    %cst_52 = arith.constant dense<0.000000e+00> : vector<16x8xf32>
    %160 = tpu.matmul %159, %1, %cst_52 {dimension_numbers = #tpu.dot_dimension_numbers<[1], [0], [0], [1], [0, 0, 1, 1], [], []>} : vector<16x32xf32>, vector<32x8xf32>, vector<16x8xf32> -> vector<16x8xf32>
    %161 = vector.broadcast %2 : vector<1x8xf32> to vector<16x8xf32>
    %162 = arith.addf %160, %161 : vector<16x8xf32>
    %c8_i32_53 = arith.constant 8 : i32
    %163 = arith.muli %c3_i32_48, %c8_i32_53 : i32
    %c0_i32_54 = arith.constant 0 : i32
    %164 = arith.addi %163, %c0_i32_54 : i32
    %165 = arith.index_cast %164 : i32 to index
    %166 = memref.load %arg0[%165] : memref<64xf32, #tpu.memory_space<smem>>
    %c1_i32_55 = arith.constant 1 : i32
    %167 = arith.addi %163, %c1_i32_55 : i32
    %168 = arith.index_cast %167 : i32 to index
    %169 = memref.load %arg0[%168] : memref<64xf32, #tpu.memory_space<smem>>
    %c2_i32_56 = arith.constant 2 : i32
    %170 = arith.addi %163, %c2_i32_56 : i32
    %171 = arith.index_cast %170 : i32 to index
    %172 = memref.load %arg0[%171] : memref<64xf32, #tpu.memory_space<smem>>
    %c3_i32_57 = arith.constant 3 : i32
    %173 = arith.addi %163, %c3_i32_57 : i32
    %174 = arith.index_cast %173 : i32 to index
    %175 = memref.load %arg0[%174] : memref<64xf32, #tpu.memory_space<smem>>
    %c4_i32_58 = arith.constant 4 : i32
    %176 = arith.addi %163, %c4_i32_58 : i32
    %177 = arith.index_cast %176 : i32 to index
    %178 = memref.load %arg0[%177] : memref<64xf32, #tpu.memory_space<smem>>
    %179 = arith.index_cast %c3_i32_48 : i32 to index
    %c0_59 = arith.constant 0 : index
    %c0_60 = arith.constant 0 : index
    %180 = vector.load %arg2[%179, %c0_59, %c0_60] : memref<8x16x8xf32, #tpu.memory_space<vmem>>, vector<1x16x8xf32>
    %181 = vector.shape_cast %180 : vector<1x16x8xf32> to vector<16x8xf32>
    %182 = vector.broadcast %166 : f32 to vector<16x8xf32>
    %183 = arith.mulf %182, %152 : vector<16x8xf32>
    %184 = vector.broadcast %169 : f32 to vector<16x8xf32>
    %185 = arith.mulf %184, %162 : vector<16x8xf32>
    %186 = arith.subf %183, %185 : vector<16x8xf32>
    %cst_61 = arith.constant -0.999989986 : f32
    %cst_62 = arith.constant 0.999989986 : f32
    %187 = vector.broadcast %cst_61 : f32 to vector<16x8xf32>
    %188 = arith.maximumf %187, %186 : vector<16x8xf32>
    %189 = vector.broadcast %cst_62 : f32 to vector<16x8xf32>
    %190 = arith.minimumf %189, %188 : vector<16x8xf32>
    %191 = vector.broadcast %172 : f32 to vector<16x8xf32>
    %192 = arith.mulf %191, %190 : vector<16x8xf32>
    %193 = vector.broadcast %175 : f32 to vector<16x8xf32>
    %194 = arith.mulf %193, %152 : vector<16x8xf32>
    %195 = arith.addf %192, %194 : vector<16x8xf32>
    %196 = vector.broadcast %178 : f32 to vector<16x8xf32>
    %197 = arith.mulf %196, %181 : vector<16x8xf32>
    %198 = arith.addf %195, %197 : vector<16x8xf32>
    %199 = arith.select %10, %3, %198 : vector<16x8xi1>, vector<16x8xf32>
    %c4_i32_63 = arith.constant 4 : i32
    %200 = arith.index_cast %c4_i32_63 : i32 to index
    %c0_64 = arith.constant 0 : index
    %201 = vector.load %arg3[%200, %c0_64] : memref<8x32xf32, #tpu.memory_space<vmem>>, vector<1x32xf32>
    %cst_65 = arith.constant dense<0.000000e+00> : vector<16x32xf32>
    %202 = tpu.matmul %199, %0, %cst_65 {dimension_numbers = #tpu.dot_dimension_numbers<[1], [0], [0], [1], [0, 0, 1, 1], [], []>} : vector<16x8xf32>, vector<8x32xf32>, vector<16x32xf32> -> vector<16x32xf32>
    %203 = vector.broadcast %201 : vector<1x32xf32> to vector<16x32xf32>
    %204 = arith.addf %202, %203 : vector<16x32xf32>
    %cst_66 = arith.constant 0.000000e+00 : f32
    %205 = vector.broadcast %cst_66 : f32 to vector<16x32xf32>
    %206 = arith.maximumf %204, %205 : vector<16x32xf32>
    %cst_67 = arith.constant dense<0.000000e+00> : vector<16x8xf32>
    %207 = tpu.matmul %206, %1, %cst_67 {dimension_numbers = #tpu.dot_dimension_numbers<[1], [0], [0], [1], [0, 0, 1, 1], [], []>} : vector<16x32xf32>, vector<32x8xf32>, vector<16x8xf32> -> vector<16x8xf32>
    %208 = vector.broadcast %2 : vector<1x8xf32> to vector<16x8xf32>
    %209 = arith.addf %207, %208 : vector<16x8xf32>
    %c8_i32_68 = arith.constant 8 : i32
    %210 = arith.muli %c4_i32_63, %c8_i32_68 : i32
    %c0_i32_69 = arith.constant 0 : i32
    %211 = arith.addi %210, %c0_i32_69 : i32
    %212 = arith.index_cast %211 : i32 to index
    %213 = memref.load %arg0[%212] : memref<64xf32, #tpu.memory_space<smem>>
    %c1_i32_70 = arith.constant 1 : i32
    %214 = arith.addi %210, %c1_i32_70 : i32
    %215 = arith.index_cast %214 : i32 to index
    %216 = memref.load %arg0[%215] : memref<64xf32, #tpu.memory_space<smem>>
    %c2_i32_71 = arith.constant 2 : i32
    %217 = arith.addi %210, %c2_i32_71 : i32
    %218 = arith.index_cast %217 : i32 to index
    %219 = memref.load %arg0[%218] : memref<64xf32, #tpu.memory_space<smem>>
    %c3_i32_72 = arith.constant 3 : i32
    %220 = arith.addi %210, %c3_i32_72 : i32
    %221 = arith.index_cast %220 : i32 to index
    %222 = memref.load %arg0[%221] : memref<64xf32, #tpu.memory_space<smem>>
    %c4_i32_73 = arith.constant 4 : i32
    %223 = arith.addi %210, %c4_i32_73 : i32
    %224 = arith.index_cast %223 : i32 to index
    %225 = memref.load %arg0[%224] : memref<64xf32, #tpu.memory_space<smem>>
    %226 = arith.index_cast %c4_i32_63 : i32 to index
    %c0_74 = arith.constant 0 : index
    %c0_75 = arith.constant 0 : index
    %227 = vector.load %arg2[%226, %c0_74, %c0_75] : memref<8x16x8xf32, #tpu.memory_space<vmem>>, vector<1x16x8xf32>
    %228 = vector.shape_cast %227 : vector<1x16x8xf32> to vector<16x8xf32>
    %229 = vector.broadcast %213 : f32 to vector<16x8xf32>
    %230 = arith.mulf %229, %199 : vector<16x8xf32>
    %231 = vector.broadcast %216 : f32 to vector<16x8xf32>
    %232 = arith.mulf %231, %209 : vector<16x8xf32>
    %233 = arith.subf %230, %232 : vector<16x8xf32>
    %cst_76 = arith.constant -0.999989986 : f32
    %cst_77 = arith.constant 0.999989986 : f32
    %234 = vector.broadcast %cst_76 : f32 to vector<16x8xf32>
    %235 = arith.maximumf %234, %233 : vector<16x8xf32>
    %236 = vector.broadcast %cst_77 : f32 to vector<16x8xf32>
    %237 = arith.minimumf %236, %235 : vector<16x8xf32>
    %238 = vector.broadcast %219 : f32 to vector<16x8xf32>
    %239 = arith.mulf %238, %237 : vector<16x8xf32>
    %240 = vector.broadcast %222 : f32 to vector<16x8xf32>
    %241 = arith.mulf %240, %199 : vector<16x8xf32>
    %242 = arith.addf %239, %241 : vector<16x8xf32>
    %243 = vector.broadcast %225 : f32 to vector<16x8xf32>
    %244 = arith.mulf %243, %228 : vector<16x8xf32>
    %245 = arith.addf %242, %244 : vector<16x8xf32>
    %246 = arith.select %10, %3, %245 : vector<16x8xi1>, vector<16x8xf32>
    %c5_i32 = arith.constant 5 : i32
    %247 = arith.index_cast %c5_i32 : i32 to index
    %c0_78 = arith.constant 0 : index
    %248 = vector.load %arg3[%247, %c0_78] : memref<8x32xf32, #tpu.memory_space<vmem>>, vector<1x32xf32>
    %cst_79 = arith.constant dense<0.000000e+00> : vector<16x32xf32>
    %249 = tpu.matmul %246, %0, %cst_79 {dimension_numbers = #tpu.dot_dimension_numbers<[1], [0], [0], [1], [0, 0, 1, 1], [], []>} : vector<16x8xf32>, vector<8x32xf32>, vector<16x32xf32> -> vector<16x32xf32>
    %250 = vector.broadcast %248 : vector<1x32xf32> to vector<16x32xf32>
    %251 = arith.addf %249, %250 : vector<16x32xf32>
    %cst_80 = arith.constant 0.000000e+00 : f32
    %252 = vector.broadcast %cst_80 : f32 to vector<16x32xf32>
    %253 = arith.maximumf %251, %252 : vector<16x32xf32>
    %cst_81 = arith.constant dense<0.000000e+00> : vector<16x8xf32>
    %254 = tpu.matmul %253, %1, %cst_81 {dimension_numbers = #tpu.dot_dimension_numbers<[1], [0], [0], [1], [0, 0, 1, 1], [], []>} : vector<16x32xf32>, vector<32x8xf32>, vector<16x8xf32> -> vector<16x8xf32>
    %255 = vector.broadcast %2 : vector<1x8xf32> to vector<16x8xf32>
    %256 = arith.addf %254, %255 : vector<16x8xf32>
    %c8_i32_82 = arith.constant 8 : i32
    %257 = arith.muli %c5_i32, %c8_i32_82 : i32
    %c0_i32_83 = arith.constant 0 : i32
    %258 = arith.addi %257, %c0_i32_83 : i32
    %259 = arith.index_cast %258 : i32 to index
    %260 = memref.load %arg0[%259] : memref<64xf32, #tpu.memory_space<smem>>
    %c1_i32_84 = arith.constant 1 : i32
    %261 = arith.addi %257, %c1_i32_84 : i32
    %262 = arith.index_cast %261 : i32 to index
    %263 = memref.load %arg0[%262] : memref<64xf32, #tpu.memory_space<smem>>
    %c2_i32_85 = arith.constant 2 : i32
    %264 = arith.addi %257, %c2_i32_85 : i32
    %265 = arith.index_cast %264 : i32 to index
    %266 = memref.load %arg0[%265] : memref<64xf32, #tpu.memory_space<smem>>
    %c3_i32_86 = arith.constant 3 : i32
    %267 = arith.addi %257, %c3_i32_86 : i32
    %268 = arith.index_cast %267 : i32 to index
    %269 = memref.load %arg0[%268] : memref<64xf32, #tpu.memory_space<smem>>
    %c4_i32_87 = arith.constant 4 : i32
    %270 = arith.addi %257, %c4_i32_87 : i32
    %271 = arith.index_cast %270 : i32 to index
    %272 = memref.load %arg0[%271] : memref<64xf32, #tpu.memory_space<smem>>
    %273 = arith.index_cast %c5_i32 : i32 to index
    %c0_88 = arith.constant 0 : index
    %c0_89 = arith.constant 0 : index
    %274 = vector.load %arg2[%273, %c0_88, %c0_89] : memref<8x16x8xf32, #tpu.memory_space<vmem>>, vector<1x16x8xf32>
    %275 = vector.shape_cast %274 : vector<1x16x8xf32> to vector<16x8xf32>
    %276 = vector.broadcast %260 : f32 to vector<16x8xf32>
    %277 = arith.mulf %276, %246 : vector<16x8xf32>
    %278 = vector.broadcast %263 : f32 to vector<16x8xf32>
    %279 = arith.mulf %278, %256 : vector<16x8xf32>
    %280 = arith.subf %277, %279 : vector<16x8xf32>
    %cst_90 = arith.constant -0.999989986 : f32
    %cst_91 = arith.constant 0.999989986 : f32
    %281 = vector.broadcast %cst_90 : f32 to vector<16x8xf32>
    %282 = arith.maximumf %281, %280 : vector<16x8xf32>
    %283 = vector.broadcast %cst_91 : f32 to vector<16x8xf32>
    %284 = arith.minimumf %283, %282 : vector<16x8xf32>
    %285 = vector.broadcast %266 : f32 to vector<16x8xf32>
    %286 = arith.mulf %285, %284 : vector<16x8xf32>
    %287 = vector.broadcast %269 : f32 to vector<16x8xf32>
    %288 = arith.mulf %287, %246 : vector<16x8xf32>
    %289 = arith.addf %286, %288 : vector<16x8xf32>
    %290 = vector.broadcast %272 : f32 to vector<16x8xf32>
    %291 = arith.mulf %290, %275 : vector<16x8xf32>
    %292 = arith.addf %289, %291 : vector<16x8xf32>
    %293 = arith.select %10, %3, %292 : vector<16x8xi1>, vector<16x8xf32>
    %c6_i32_92 = arith.constant 6 : i32
    %294 = arith.index_cast %c6_i32_92 : i32 to index
    %c0_93 = arith.constant 0 : index
    %295 = vector.load %arg3[%294, %c0_93] : memref<8x32xf32, #tpu.memory_space<vmem>>, vector<1x32xf32>
    %cst_94 = arith.constant dense<0.000000e+00> : vector<16x32xf32>
    %296 = tpu.matmul %293, %0, %cst_94 {dimension_numbers = #tpu.dot_dimension_numbers<[1], [0], [0], [1], [0, 0, 1, 1], [], []>} : vector<16x8xf32>, vector<8x32xf32>, vector<16x32xf32> -> vector<16x32xf32>
    %297 = vector.broadcast %295 : vector<1x32xf32> to vector<16x32xf32>
    %298 = arith.addf %296, %297 : vector<16x32xf32>
    %cst_95 = arith.constant 0.000000e+00 : f32
    %299 = vector.broadcast %cst_95 : f32 to vector<16x32xf32>
    %300 = arith.maximumf %298, %299 : vector<16x32xf32>
    %cst_96 = arith.constant dense<0.000000e+00> : vector<16x8xf32>
    %301 = tpu.matmul %300, %1, %cst_96 {dimension_numbers = #tpu.dot_dimension_numbers<[1], [0], [0], [1], [0, 0, 1, 1], [], []>} : vector<16x32xf32>, vector<32x8xf32>, vector<16x8xf32> -> vector<16x8xf32>
    %302 = vector.broadcast %2 : vector<1x8xf32> to vector<16x8xf32>
    %303 = arith.addf %301, %302 : vector<16x8xf32>
    %c8_i32_97 = arith.constant 8 : i32
    %304 = arith.muli %c6_i32_92, %c8_i32_97 : i32
    %c0_i32_98 = arith.constant 0 : i32
    %305 = arith.addi %304, %c0_i32_98 : i32
    %306 = arith.index_cast %305 : i32 to index
    %307 = memref.load %arg0[%306] : memref<64xf32, #tpu.memory_space<smem>>
    %c1_i32_99 = arith.constant 1 : i32
    %308 = arith.addi %304, %c1_i32_99 : i32
    %309 = arith.index_cast %308 : i32 to index
    %310 = memref.load %arg0[%309] : memref<64xf32, #tpu.memory_space<smem>>
    %c2_i32_100 = arith.constant 2 : i32
    %311 = arith.addi %304, %c2_i32_100 : i32
    %312 = arith.index_cast %311 : i32 to index
    %313 = memref.load %arg0[%312] : memref<64xf32, #tpu.memory_space<smem>>
    %c3_i32_101 = arith.constant 3 : i32
    %314 = arith.addi %304, %c3_i32_101 : i32
    %315 = arith.index_cast %314 : i32 to index
    %316 = memref.load %arg0[%315] : memref<64xf32, #tpu.memory_space<smem>>
    %c4_i32_102 = arith.constant 4 : i32
    %317 = arith.addi %304, %c4_i32_102 : i32
    %318 = arith.index_cast %317 : i32 to index
    %319 = memref.load %arg0[%318] : memref<64xf32, #tpu.memory_space<smem>>
    %320 = arith.index_cast %c6_i32_92 : i32 to index
    %c0_103 = arith.constant 0 : index
    %c0_104 = arith.constant 0 : index
    %321 = vector.load %arg2[%320, %c0_103, %c0_104] : memref<8x16x8xf32, #tpu.memory_space<vmem>>, vector<1x16x8xf32>
    %322 = vector.shape_cast %321 : vector<1x16x8xf32> to vector<16x8xf32>
    %323 = vector.broadcast %307 : f32 to vector<16x8xf32>
    %324 = arith.mulf %323, %293 : vector<16x8xf32>
    %325 = vector.broadcast %310 : f32 to vector<16x8xf32>
    %326 = arith.mulf %325, %303 : vector<16x8xf32>
    %327 = arith.subf %324, %326 : vector<16x8xf32>
    %cst_105 = arith.constant -0.999989986 : f32
    %cst_106 = arith.constant 0.999989986 : f32
    %328 = vector.broadcast %cst_105 : f32 to vector<16x8xf32>
    %329 = arith.maximumf %328, %327 : vector<16x8xf32>
    %330 = vector.broadcast %cst_106 : f32 to vector<16x8xf32>
    %331 = arith.minimumf %330, %329 : vector<16x8xf32>
    %332 = vector.broadcast %313 : f32 to vector<16x8xf32>
    %333 = arith.mulf %332, %331 : vector<16x8xf32>
    %334 = vector.broadcast %316 : f32 to vector<16x8xf32>
    %335 = arith.mulf %334, %293 : vector<16x8xf32>
    %336 = arith.addf %333, %335 : vector<16x8xf32>
    %337 = vector.broadcast %319 : f32 to vector<16x8xf32>
    %338 = arith.mulf %337, %322 : vector<16x8xf32>
    %339 = arith.addf %336, %338 : vector<16x8xf32>
    %340 = arith.select %10, %3, %339 : vector<16x8xi1>, vector<16x8xf32>
    %c7_i32 = arith.constant 7 : i32
    %341 = arith.index_cast %c7_i32 : i32 to index
    %c0_107 = arith.constant 0 : index
    %342 = vector.load %arg3[%341, %c0_107] : memref<8x32xf32, #tpu.memory_space<vmem>>, vector<1x32xf32>
    %cst_108 = arith.constant dense<0.000000e+00> : vector<16x32xf32>
    %343 = tpu.matmul %340, %0, %cst_108 {dimension_numbers = #tpu.dot_dimension_numbers<[1], [0], [0], [1], [0, 0, 1, 1], [], []>} : vector<16x8xf32>, vector<8x32xf32>, vector<16x32xf32> -> vector<16x32xf32>
    %344 = vector.broadcast %342 : vector<1x32xf32> to vector<16x32xf32>
    %345 = arith.addf %343, %344 : vector<16x32xf32>
    %cst_109 = arith.constant 0.000000e+00 : f32
    %346 = vector.broadcast %cst_109 : f32 to vector<16x32xf32>
    %347 = arith.maximumf %345, %346 : vector<16x32xf32>
    %cst_110 = arith.constant dense<0.000000e+00> : vector<16x8xf32>
    %348 = tpu.matmul %347, %1, %cst_110 {dimension_numbers = #tpu.dot_dimension_numbers<[1], [0], [0], [1], [0, 0, 1, 1], [], []>} : vector<16x32xf32>, vector<32x8xf32>, vector<16x8xf32> -> vector<16x8xf32>
    %349 = vector.broadcast %2 : vector<1x8xf32> to vector<16x8xf32>
    %350 = arith.addf %348, %349 : vector<16x8xf32>
    %c8_i32_111 = arith.constant 8 : i32
    %351 = arith.muli %c7_i32, %c8_i32_111 : i32
    %c0_i32_112 = arith.constant 0 : i32
    %352 = arith.addi %351, %c0_i32_112 : i32
    %353 = arith.index_cast %352 : i32 to index
    %354 = memref.load %arg0[%353] : memref<64xf32, #tpu.memory_space<smem>>
    %c1_i32_113 = arith.constant 1 : i32
    %355 = arith.addi %351, %c1_i32_113 : i32
    %356 = arith.index_cast %355 : i32 to index
    %357 = memref.load %arg0[%356] : memref<64xf32, #tpu.memory_space<smem>>
    %c2_i32_114 = arith.constant 2 : i32
    %358 = arith.addi %351, %c2_i32_114 : i32
    %359 = arith.index_cast %358 : i32 to index
    %360 = memref.load %arg0[%359] : memref<64xf32, #tpu.memory_space<smem>>
    %c3_i32_115 = arith.constant 3 : i32
    %361 = arith.addi %351, %c3_i32_115 : i32
    %362 = arith.index_cast %361 : i32 to index
    %363 = memref.load %arg0[%362] : memref<64xf32, #tpu.memory_space<smem>>
    %c4_i32_116 = arith.constant 4 : i32
    %364 = arith.addi %351, %c4_i32_116 : i32
    %365 = arith.index_cast %364 : i32 to index
    %366 = memref.load %arg0[%365] : memref<64xf32, #tpu.memory_space<smem>>
    %367 = arith.index_cast %c7_i32 : i32 to index
    %c0_117 = arith.constant 0 : index
    %c0_118 = arith.constant 0 : index
    %368 = vector.load %arg2[%367, %c0_117, %c0_118] : memref<8x16x8xf32, #tpu.memory_space<vmem>>, vector<1x16x8xf32>
    %369 = vector.shape_cast %368 : vector<1x16x8xf32> to vector<16x8xf32>
    %370 = vector.broadcast %354 : f32 to vector<16x8xf32>
    %371 = arith.mulf %370, %340 : vector<16x8xf32>
    %372 = vector.broadcast %357 : f32 to vector<16x8xf32>
    %373 = arith.mulf %372, %350 : vector<16x8xf32>
    %374 = arith.subf %371, %373 : vector<16x8xf32>
    %cst_119 = arith.constant -0.999989986 : f32
    %cst_120 = arith.constant 0.999989986 : f32
    %375 = vector.broadcast %cst_119 : f32 to vector<16x8xf32>
    %376 = arith.maximumf %375, %374 : vector<16x8xf32>
    %377 = vector.broadcast %cst_120 : f32 to vector<16x8xf32>
    %378 = arith.minimumf %377, %376 : vector<16x8xf32>
    %379 = vector.broadcast %360 : f32 to vector<16x8xf32>
    %380 = arith.mulf %379, %378 : vector<16x8xf32>
    %381 = vector.broadcast %363 : f32 to vector<16x8xf32>
    %382 = arith.mulf %381, %340 : vector<16x8xf32>
    %383 = arith.addf %380, %382 : vector<16x8xf32>
    %384 = vector.broadcast %366 : f32 to vector<16x8xf32>
    %385 = arith.mulf %384, %369 : vector<16x8xf32>
    %386 = arith.addf %383, %385 : vector<16x8xf32>
    %387 = arith.select %10, %3, %386 : vector<16x8xi1>, vector<16x8xf32>
    %c8_i32_121 = arith.constant 8 : i32
    %c0_122 = arith.constant 0 : index
    %c0_123 = arith.constant 0 : index
    %388 = vector.load %arg8[%c0_122, %c0_123] : memref<16x8xf32, #tpu.memory_space<vmem>>, vector<16x8xf32>
    tpu.vector_store %arg8[%c0_122, %c0_123], %387 {strides = array<i32>} : memref<16x8xf32, #tpu.memory_space<vmem>>, vector<16x8xf32>,
    return
  }
}

</mosaic_0001>

<bundles_post_ra>
// kernel: _lambda_.1
= control target key start
LH: loop header
LB: loop body
LE: loop exit
PB: predicated region body
PF: predicated region fallthrough
CT: control target
= control target key end

     0   :  { %13 = vsyncpa [#allocation3], 0  ;;  %s2390_s0 = inlined_call_operand.vmem [shape: f32[64], index: 0, kind: input, shape index: {}]   ;;  %s2391_s1 = inlined_call_operand.vmem [shape: f32[16,8], index: 1, kind: input, shape index: {}, may-alias: {1,8}]   ;;  %s2392_s2 = inlined_call_operand.vmem [shape: f32[8,16,8], index: 2, kind: input, shape index: {}]   ;;  %s2393_s3 = inlined_call_operand.vmem [shape: f32[8,32], index: 3, kind: input, shape index: {}]   ;;  %s2394_s4 = inlined_call_operand.vmem [shape: f32[16,8], index: 4, kind: input, shape index: {}]   ;;  %s2395_s5 = inlined_call_operand.vmem [shape: f32[8,32], index: 5, kind: input, shape index: {}]   ;;  %s2396_s6 = inlined_call_operand.vmem [shape: f32[32,8], index: 6, kind: input, shape index: {}]   ;;  %s2397_s7 = inlined_call_operand.vmem [shape: f32[1,8], index: 7, kind: input, shape index: {}]   ;;  %s2398_s8 = inlined_call_operand.vmem [shape: f32[16,8], index: 8, kind: output, shape index: {}, may-alias: {1,8}]  }
   0x1   :  { %s20_s29 = sshll.u32 %s2390_s0, 4  ;;  %s21_s29 = int_to_ptr.vmem [resolvable:$true] %s20_s29 }
   0x2   :  { %s2083_s30 = scalar_lea.vmem %s21_s29, 16  ;;  %p2088_p1 = scmp.lt.s32.totalorder %s21_s29, %s21_s29 }
   0x3   :  { %p2084_p0 = scmp.ne.s32.totalorder %s21_s29, %s2083_s30  ;;  %p2089_p2 = scmp.lt.s32.totalorder %s2083_s30, %s2083_s30 }
   0x5   :  { %p2090_p3 = por %p2089_p2, %p2088_p1 }
   0x7   :  { %p2091_p4 = pnand %p2090_p3, %p2084_p0 }
   0x9   :  { %2094 = shalt.err (!%p2091_p4)
}
   0xa   :  { %s2097_s9 = smov [#allocation2]  }
   0xb   :  { %23 = dma.vmem_to_smem %s21_s29, 16, %s2097_s9, [#allocation3]  }
   0xc   :  { %2095 = dma.done.wait [#allocation3], 16  }
   0xd   :  { %2096 = vsyncadd [#allocation3], 4294967280 }
   0xe   :  { %41 = sfence }
   0xf   :  { %v2149_v0 = vld [vmem:[%s2395_s5] sm:$0xff]  ;;  %vm67_vm0 = vcmask 64512   ;;  %v61_v2 = vld [vmem:[%s2391_s1 + $0x8] sm:$0xff]  ;;  %v45_v6 = vld [vmem:[%s2396_s6 + $0x10] sm:$0xff]  ;;  %vm157_vm1 = vcmask 261120   ;;  %s1714_s23 = sld [smem:[#allocation2 + $0x1]]  ;;  %v50_v25 = vlaneseq }
  0x10   :  { %v60_v1 = vld [vmem:[%s2391_s1] sm:$0xff]  ;;  %1890 = vmatprep.subr.mxu1 %v2149_v0  ;;  %v44_v4 = vld [vmem:[%s2396_s6 + $0x8] sm:$0xff]  ;;  %1906 = vmatprep.subr.mxu0 %v2149_v0  ;;  %v46_v7 = vld [vmem:[%s2396_s6 + $0x18] sm:$0xff]  ;;  %s1716_s24 = sld [smem:[#allocation2 + $0x3]]  ;;  %s1715_s27 = sld [smem:[#allocation2 + $0x2]] }
  0x11   :  { %1892 = vmatprep.mubr.msk.f32.mxu1 %vm67_vm0, %v60_v1  ;;  %v43_v3 = vld [vmem:[%s2396_s6] sm:$0xff]  ;;  %1891 = vmatpush3.msra.mxu1 %v2149_v0  ;;  %v2180_v8 = vpack.c.bf16 %v46_v7, %v45_v6  ;;  %s239_s6 = sld [smem:[#allocation2]]  ;;  %s2197_s28 = sld [smem:[#allocation2 + $0x4]]  ;;  %v51_v32 = vshrl.u32 %v50_v25, 7  ;;  %v54_v33 = vand.u32 127, %v50_v25  ;;  %v245_v41 = vld [vmem:[%s2392_s2 + $0x8] sm:$0xff] }
  0x12   :  { %v2166_v5 = vpack.c.bf16 %v44_v4, %v43_v3  ;;  %1893 = vmatmul.mubr.msk.f32.vlgmr.msra.gmra.mrb[0].mxu1 %vm67_vm0, %v61_v2  ;;  %1907 = vmatpush3.msra.mxu0 %v2149_v0  ;;  %v1708_v9 = vld [vmem:[%s2393_s3] ss:$0 sm:$0xff]  ;;  %v1720_v52 = vld [vmem:[%s2393_s3 + $0x1] ss:$0 sm:$0xff]  ;;  %s1725_s0 = sld [smem:[#allocation2 + $0x8]]  ;;  %s1726_s13 = sld [smem:[#allocation2 + $0x9]] }
  0x13   :  { %v2195_v16 = vld [vmem:[%s2397_s7] ss:$0 sm:$0xff]  ;;  %vm55_vm2 = vcmp.lt.s32.totalorder %v51_v32, 2  ;;  %vm57_vm3 = vcmp.lt.s32.totalorder %v54_v33, 6  ;;  %s1728_s14 = sld [smem:[#allocation2 + $0xb]]  ;;  %s1727_s15 = sld [smem:[#allocation2 + $0xa]] }
  0x14   :  { %2019 = vmatprep.subr.bf16.mxu1 %v2166_v5  ;;  %2027 = vmatprep.subr.bf16.mxu0 %v2166_v5  ;;  %v244_v35 = vld [vmem:[%s2392_s2] sm:$0xff]  ;;  %vm2213_vm4 = vmand %vm55_vm2, %vm57_vm3  ;;  %s1729_s16 = sld [smem:[#allocation2 + $0xc]]  ;;  %s1739_s21 = sld [smem:[#allocation2 + $0x10]] }
  0x15   :  { %2021 = vmatpush3.bf16.msra.mxu1 %v2166_v5  ;;  %v249_v19 = vstv %s1714_s23  ;;  %v2211_v47 = vld [vmem:[%s2394_s4] sm:$0xff]  ;;  %s1740_s22 = sld [smem:[#allocation2 + $0x11]]  ;;  %s1741_s23 = sld [smem:[#allocation2 + $0x12]] }
  0x16   :  { %2023 = vmatprep.subr.bf16.mxu1 %v2180_v8  ;;  %v261_v28 = vstv %s1716_s24  ;;  %v258_v30 = vstv %s1715_s27  ;;  %s1743_s24 = sld [smem:[#allocation2 + $0x14]]  ;;  %s1753_s30 = sld [smem:[#allocation2 + $0x18]] }
  0x17   :  { %v246_v17 = vstv %s239_s6  ;;  %v266_v36 = vstv %s2197_s28  ;;  %v262_v37 = vmul.f32 %v261_v28, %v60_v1  ;;  %v263_v38 = vmul.f32 %v261_v28, %v61_v2  ;;  %s1742_s6 = sld [smem:[#allocation2 + $0x13]]  ;;  %s1754_s9 = sld [smem:[#allocation2 + $0x19]] }
  0x18   :  { %v248_v21 = vmul.f32 %v246_v17, %v61_v2  ;;  %v247_v24 = vmul.f32 %v246_v17, %v60_v1  ;;  %v267_v43 = vmul.f32 %v266_v36, %v244_v35  ;;  %v268_v46 = vmul.f32 %v266_v36, %v245_v41  ;;  %s1756_s10 = sld [smem:[#allocation2 + $0x1b]]  ;;  %s1755_s11 = sld [smem:[#allocation2 + $0x1a]] }
  0x19   :  { %2025 = vmatpush3.bf16.msra.mxu1 %v2180_v8  ;;  %v450_v59 = vstv %s1725_s0  ;;  %v453_v61 = vstv %s1726_s13  ;;  %s1757_s4 = sld [smem:[#allocation2 + $0x1c]]  ;;  %s1767_s17 = sld [smem:[#allocation2 + $0x20]] }
  0x1a   :  { %1922 = vmatprep.subr.mxu1 %v2149_v0  ;;  %v654_v36 = vstv %s1739_s21  ;;  %s1768_s5 = sld [smem:[#allocation2 + $0x21]]  ;;  %s1770_s1 = sld [smem:[#allocation2 + $0x23]] }
  0x1b   :  { %s1769_s18 = sld [smem:[#allocation2 + $0x22]]  ;;  %s1771_s19 = sld [smem:[#allocation2 + $0x24]] }
  0x1c   :  { %s1781_s25 = sld [smem:[#allocation2 + $0x28]]  ;;  %s1782_s26 = sld [smem:[#allocation2 + $0x29]] }
  0x1d   :  { %s1784_s27 = sld [smem:[#allocation2 + $0x2b]]  ;;  %s1783_s28 = sld [smem:[#allocation2 + $0x2a]] }
  0x1e   :  { %s1785_s7 = sld [smem:[#allocation2 + $0x2c]]  ;;  %s1795_s12 = sld [smem:[#allocation2 + $0x30]] }
  0x1f   :  { %s1796_s0 = sld [smem:[#allocation2 + $0x31]]  ;;  %s1798_s13 = sld [smem:[#allocation2 + $0x33]] }
  0x20   :  { %s1809_s20 = sld [smem:[#allocation2 + $0x38]]  ;;  %s1810_s21 = sld [smem:[#allocation2 + $0x39]] }
  0xe5   :  { %v1894_v10 = vpop.f32.mrb[0].mxu1 }
  0xe6   :  { %v146_v11 = vadd.f32 %v1894_v10, %v1708_v9  ;;  %v140_v12 = vpop.f32.mrb[1].mxu1  ;;  %v462_v10 = vstv %s1727_s15  ;;  %s1799_s15 = sld [smem:[#allocation2 + $0x34]] }
  0xe7   :  { %v141_v13 = vadd.f32 %v1708_v9, %v140_v12  ;;  %v465_v9 = vstv %s1728_s14  ;;  %s1797_s14 = sld [smem:[#allocation2 + $0x32]] }
  0xe8   :  { %v150_v15 = vmax.f32 %v146_v11, 0.0 }
  0xe9   :  { %v149_v14 = vmax.f32 %v141_v13, 0.0  ;;  %v470_v13 = vstv %s1729_s16 }
  0xeb   :  { %1903 = vmatprep.mubr.msk.f32.mxu1 %vm157_vm1, %v149_v14  ;;  %v1730_v14 = vld [vmem:[%s2392_s2 + $0x10] sm:$0xff] }
  0xec   :  { %1904 = vmatmul.mubr.msk.f32.vlgmr.msra.gmra.mrb[2].mxu1 %vm157_vm1, %v150_v15 }
  0xed   :  { %1923 = vmatpush3.msra.mxu1 %v2149_v0 }
  0xee   :  { %2035 = vmatprep.subr.bf16.mxu1 %v2166_v5 }
 0x1bf   :  { %v1905_v18 = vpop.f32.mrb[2].mxu1 }
 0x1c0   :  { %v236_v20 = vadd.f32 %v1905_v18, %v2195_v16  ;;  %v230_v22 = vpop.f32.mrb[3].mxu1  ;;  %v1731_v18 = vld [vmem:[%s2392_s2 + $0x18] sm:$0xff] }
 0x1c1   :  { %v231_v23 = vadd.f32 %v2195_v16, %v230_v22  ;;  %v471_v22 = vmul.f32 %v1730_v14, %v470_v13  ;;  %v858_v14 = vstv %s1753_s30 }
 0x1c2   :  { %v251_v26 = vmul.f32 %v249_v19, %v236_v20 }
 0x1c3   :  { %v250_v27 = vmul.f32 %v249_v19, %v231_v23 }
 0x1c4   :  { %v253_v29 = vsub.f32 %v248_v21, %v251_v26 }
 0x1c5   :  { %v252_v31 = vsub.f32 %v247_v24, %v250_v27  ;;  %v472_v24 = vmul.f32 %v1731_v18, %v470_v13 }
 0x1c6   :  { %v1719_v34 = vclamps-f32 %v253_v29, 0.99999  ;;  %v1734_v29 = vld [vmem:[%s2393_s3 + $0x2] ss:$0 sm:$0xff] }
 0x1c7   :  { %v1718_v39 = vclamps-f32 %v252_v31, 0.99999 }
 0x1c8   :  { %v260_v40 = vmul.f32 %v1719_v34, %v258_v30 }
 0x1c9   :  { %v259_v42 = vmul.f32 %v1718_v39, %v258_v30 }
 0x1ca   :  { %v265_v44 = vadd.f32 %v263_v38, %v260_v40  ;;  %v657_v38 = vstv %s1740_s22  ;;  %s1812_s22 = sld [smem:[#allocation2 + $0x3b]] }
 0x1cb   :  { %v264_v45 = vadd.f32 %v262_v37, %v259_v42 }
 0x1cc   :  { %v270_v50 = vadd.f32 %v268_v46, %v265_v44 }
 0x1cd   :  { %v269_v49 = vadd.f32 %v267_v43, %v264_v45 }
 0x1ce   :  { %v452_v2 = vmul.f32 %v450_v59, %v270_v50  ;;  %v467_v17 = vmul.f32 %v465_v9, %v270_v50 }
 0x1cf   :  { %v271_v51 = vsel %vm2213_vm4, %v2211_v47, %v269_v49  ;;  %v669_v49 = vstv %s1742_s6  ;;  %s1811_s6 = sld [smem:[#allocation2 + $0x3a]] }
 0x1d0   :  { %1908 = vmatprep.mubr.msk.f32.mxu0 %vm67_vm0, %v271_v51  ;;  %v451_v4 = vmul.f32 %v450_v59, %v271_v51  ;;  %v466_v20 = vmul.f32 %v465_v9, %v271_v51 }
 0x1d1   :  { %1909 = vmatmul.mubr.msk.f32.vlgmr.msra.gmra.mrb[0].mxu0 %vm67_vm0, %v270_v50  ;;  %v666_v50 = vstv %s1741_s23  ;;  %s1813_s23 = sld [smem:[#allocation2 + $0x3c]] }
 0x1d2   :  { %2029 = vmatpush3.bf16.msra.mxu0 %v2166_v5 }
 0x1d3   :  { %2031 = vmatprep.subr.bf16.mxu0 %v2180_v8 }
 0x1d6   :  { %2033 = vmatpush3.bf16.msra.mxu0 %v2180_v8 }
 0x1d7   :  { %1938 = vmatprep.subr.mxu0 %v2149_v0 }
 0x2a4   :  { %v1910_v53 = vpop.f32.mrb[0].mxu0 }
 0x2a5   :  { %v356_v54 = vadd.f32 %v1910_v53, %v1720_v52  ;;  %v350_v55 = vpop.f32.mrb[1].mxu0  ;;  %v674_v53 = vstv %s1743_s24 }
 0x2a6   :  { %v351_v56 = vadd.f32 %v1720_v52, %v350_v55 }
 0x2a7   :  { %v360_v58 = vmax.f32 %v356_v54, 0.0  ;;  %v1744_v54 = vld [vmem:[%s2392_s2 + $0x20] sm:$0xff] }
 0x2a8   :  { %v359_v57 = vmax.f32 %v351_v56, 0.0 }
 0x2aa   :  { %1919 = vmatprep.mubr.msk.f32.mxu0 %vm157_vm1, %v359_v57  ;;  %v1745_v57 = vld [vmem:[%s2392_s2 + $0x28] sm:$0xff] }
 0x2ab   :  { %1920 = vmatmul.mubr.msk.f32.vlgmr.msra.gmra.mrb[2].mxu0 %vm157_vm1, %v360_v58 }
 0x2ac   :  { %1939 = vmatpush3.msra.mxu0 %v2149_v0 }
 0x2ad   :  { %2043 = vmatprep.subr.bf16.mxu0 %v2166_v5 }
 0x37e   :  { %v1921_v60 = vpop.f32.mrb[2].mxu0 }
 0x37f   :  { %v439_v62 = vadd.f32 %v1921_v60, %v2195_v16  ;;  %v433_v63 = vpop.f32.mrb[3].mxu0 }
 0x380   :  { %v434_v1 = vadd.f32 %v2195_v16, %v433_v63  ;;  %v676_v63 = vmul.f32 %v1745_v57, %v674_v53 }
 0x381   :  { %v455_v3 = vmul.f32 %v453_v61, %v439_v62 }
 0x382   :  { %v454_v6 = vmul.f32 %v453_v61, %v434_v1  ;;  %v675_v61 = vmul.f32 %v1744_v54, %v674_v53  ;;  %v1062_v54 = vstv %s1767_s17 }
 0x383   :  { %v457_v7 = vsub.f32 %v452_v2, %v455_v3 }
 0x384   :  { %v456_v11 = vsub.f32 %v451_v4, %v454_v6  ;;  %v1748_v6 = vld [vmem:[%s2393_s3 + $0x3] ss:$0 sm:$0xff] }
 0x385   :  { %v1733_v12 = vclamps-f32 %v457_v7, 0.99999 }
 0x386   :  { %v1732_v15 = vclamps-f32 %v456_v11, 0.99999 }
 0x387   :  { %v464_v19 = vmul.f32 %v1733_v12, %v462_v10 }
 0x388   :  { %v463_v21 = vmul.f32 %v1732_v15, %v462_v10 }
 0x389   :  { %v469_v23 = vadd.f32 %v467_v17, %v464_v19  ;;  %v861_v17 = vstv %s1754_s9 }
 0x38a   :  { %v468_v25 = vadd.f32 %v466_v20, %v463_v21 }
 0x38b   :  { %v474_v27 = vadd.f32 %v472_v24, %v469_v23 }
 0x38c   :  { %v473_v26 = vadd.f32 %v471_v22, %v468_v25 }
 0x38d   :  { %v656_v42 = vmul.f32 %v654_v36, %v474_v27  ;;  %v671_v56 = vmul.f32 %v669_v49, %v474_v27 }
 0x38e   :  { %v475_v28 = vsel %vm2213_vm4, %v2211_v47, %v473_v26  ;;  %v873_v26 = vstv %s1756_s10 }
 0x38f   :  { %1924 = vmatprep.mubr.msk.f32.mxu1 %vm67_vm0, %v475_v28  ;;  %v655_v44 = vmul.f32 %v654_v36, %v475_v28  ;;  %v670_v59 = vmul.f32 %v669_v49, %v475_v28 }
 0x390   :  { %1925 = vmatmul.mubr.msk.f32.vlgmr.msra.gmra.mrb[4].mxu1 %vm67_vm0, %v474_v27  ;;  %v870_v27 = vstv %s1755_s11 }
 0x391   :  { %2037 = vmatpush3.bf16.msra.mxu1 %v2166_v5 }
 0x392   :  { %2039 = vmatprep.subr.bf16.mxu1 %v2180_v8 }
 0x395   :  { %2041 = vmatpush3.bf16.msra.mxu1 %v2180_v8 }
 0x396   :  { %1954 = vmatprep.subr.mxu1 %v2149_v0 }
 0x463   :  { %v1926_v30 = vpop.f32.mrb[4].mxu1 }
 0x464   :  { %v560_v31 = vadd.f32 %v1926_v30, %v1734_v29  ;;  %v554_v32 = vpop.f32.mrb[5].mxu1  ;;  %v878_v30 = vstv %s1757_s4 }
 0x465   :  { %v555_v33 = vadd.f32 %v1734_v29, %v554_v32 }
 0x466   :  { %v564_v35 = vmax.f32 %v560_v31, 0.0  ;;  %v1758_v31 = vld [vmem:[%s2392_s2 + $0x30] sm:$0xff] }
 0x467   :  { %v563_v34 = vmax.f32 %v555_v33, 0.0 }
 0x469   :  { %1935 = vmatprep.mubr.msk.f32.mxu1 %vm157_vm1, %v563_v34  ;;  %v1759_v34 = vld [vmem:[%s2392_s2 + $0x38] sm:$0xff] }
 0x46a   :  { %1936 = vmatmul.mubr.msk.f32.vlgmr.msra.gmra.mrb[6].mxu1 %vm157_vm1, %v564_v35 }
 0x46b   :  { %1955 = vmatpush3.msra.mxu1 %v2149_v0 }
 0x46c   :  { %2051 = vmatprep.subr.bf16.mxu1 %v2166_v5 }
 0x53d   :  { %v1937_v37 = vpop.f32.mrb[6].mxu1 }
 0x53e   :  { %v643_v39 = vadd.f32 %v1937_v37, %v2195_v16  ;;  %v637_v40 = vpop.f32.mrb[7].mxu1 }
 0x53f   :  { %v638_v41 = vadd.f32 %v2195_v16, %v637_v40  ;;  %v880_v40 = vmul.f32 %v1759_v34, %v878_v30 }
 0x540   :  { %v659_v43 = vmul.f32 %v657_v38, %v643_v39 }
 0x541   :  { %v658_v45 = vmul.f32 %v657_v38, %v638_v41  ;;  %v879_v38 = vmul.f32 %v1758_v31, %v878_v30  ;;  %v1266_v31 = vstv %s1781_s25 }
 0x542   :  { %v661_v46 = vsub.f32 %v656_v42, %v659_v43 }
 0x543   :  { %v660_v51 = vsub.f32 %v655_v44, %v658_v45  ;;  %v1762_v45 = vld [vmem:[%s2393_s3 + $0x4] ss:$0 sm:$0xff] }
 0x544   :  { %v1747_v52 = vclamps-f32 %v661_v46, 0.99999 }
 0x545   :  { %v1746_v55 = vclamps-f32 %v660_v51, 0.99999 }
 0x546   :  { %v668_v58 = vmul.f32 %v1747_v52, %v666_v50 }
 0x547   :  { %v667_v60 = vmul.f32 %v1746_v55, %v666_v50 }
 0x548   :  { %v673_v62 = vadd.f32 %v671_v56, %v668_v58  ;;  %v1065_v56 = vstv %s1768_s5 }
 0x549   :  { %v672_v1 = vadd.f32 %v670_v59, %v667_v60 }
 0x54a   :  { %v678_v3 = vadd.f32 %v676_v63, %v673_v62 }
 0x54b   :  { %v677_v2 = vadd.f32 %v675_v61, %v672_v1 }
 0x54c   :  { %v860_v21 = vmul.f32 %v858_v14, %v678_v3  ;;  %v875_v33 = vmul.f32 %v873_v26, %v678_v3 }
 0x54d   :  { %v679_v4 = vsel %vm2213_vm4, %v2211_v47, %v677_v2  ;;  %v1077_v2 = vstv %s1770_s1 }
 0x54e   :  { %1940 = vmatprep.mubr.msk.f32.mxu0 %vm67_vm0, %v679_v4  ;;  %v859_v23 = vmul.f32 %v858_v14, %v679_v4  ;;  %v874_v36 = vmul.f32 %v873_v26, %v679_v4 }
 0x54f   :  { %1941 = vmatmul.mubr.msk.f32.vlgmr.msra.gmra.mrb[4].mxu0 %vm67_vm0, %v678_v3  ;;  %v1074_v3 = vstv %s1769_s18 }
 0x550   :  { %2045 = vmatpush3.bf16.msra.mxu0 %v2166_v5 }
 0x551   :  { %2047 = vmatprep.subr.bf16.mxu0 %v2180_v8 }
 0x554   :  { %2049 = vmatpush3.bf16.msra.mxu0 %v2180_v8 }
 0x555   :  { %1970 = vmatprep.subr.mxu0 %v2149_v0 }
 0x622   :  { %v1942_v7 = vpop.f32.mrb[4].mxu0 }
 0x623   :  { %v764_v9 = vadd.f32 %v1942_v7, %v1748_v6  ;;  %v758_v10 = vpop.f32.mrb[5].mxu0  ;;  %v1082_v7 = vstv %s1771_s19 }
 0x624   :  { %v759_v11 = vadd.f32 %v1748_v6, %v758_v10 }
 0x625   :  { %v768_v13 = vmax.f32 %v764_v9, 0.0  ;;  %v1772_v9 = vld [vmem:[%s2392_s2 + $0x40] sm:$0xff] }
 0x626   :  { %v767_v12 = vmax.f32 %v759_v11, 0.0 }
 0x628   :  { %1951 = vmatprep.mubr.msk.f32.mxu0 %vm157_vm1, %v767_v12  ;;  %v1773_v12 = vld [vmem:[%s2392_s2 + $0x48] sm:$0xff] }
 0x629   :  { %1952 = vmatmul.mubr.msk.f32.vlgmr.msra.gmra.mrb[6].mxu0 %vm157_vm1, %v768_v13 }
 0x62a   :  { %1971 = vmatpush3.msra.mxu0 %v2149_v0 }
 0x62b   :  { %2059 = vmatprep.subr.bf16.mxu0 %v2166_v5 }
 0x6fc   :  { %v1953_v15 = vpop.f32.mrb[6].mxu0 }
 0x6fd   :  { %v847_v18 = vadd.f32 %v1953_v15, %v2195_v16  ;;  %v841_v19 = vpop.f32.mrb[7].mxu0 }
 0x6fe   :  { %v842_v20 = vadd.f32 %v2195_v16, %v841_v19  ;;  %v1084_v19 = vmul.f32 %v1773_v12, %v1082_v7 }
 0x6ff   :  { %v863_v22 = vmul.f32 %v861_v17, %v847_v18 }
 0x700   :  { %v862_v24 = vmul.f32 %v861_v17, %v842_v20  ;;  %v1083_v17 = vmul.f32 %v1772_v9, %v1082_v7  ;;  %v1470_v7 = vstv %s1795_s12 }
 0x701   :  { %v865_v25 = vsub.f32 %v860_v21, %v863_v22 }
 0x702   :  { %v864_v28 = vsub.f32 %v859_v23, %v862_v24  ;;  %v1776_v24 = vld [vmem:[%s2393_s3 + $0x5] ss:$0 sm:$0xff] }
 0x703   :  { %v1761_v29 = vclamps-f32 %v865_v25, 0.99999 }
 0x704   :  { %v1760_v32 = vclamps-f32 %v864_v28, 0.99999 }
 0x705   :  { %v872_v35 = vmul.f32 %v1761_v29, %v870_v27 }
 0x706   :  { %v871_v37 = vmul.f32 %v1760_v32, %v870_v27 }
 0x707   :  { %v877_v39 = vadd.f32 %v875_v33, %v872_v35  ;;  %v1269_v33 = vstv %s1782_s26 }
 0x708   :  { %v876_v41 = vadd.f32 %v874_v36, %v871_v37 }
 0x709   :  { %v882_v43 = vadd.f32 %v880_v40, %v877_v39 }
 0x70a   :  { %v881_v42 = vadd.f32 %v879_v38, %v876_v41  ;;  %v1281_v41 = vstv %s1784_s27 }
 0x70b   :  { %v1064_v60 = vmul.f32 %v1062_v54, %v882_v43  ;;  %v1079_v11 = vmul.f32 %v1077_v2, %v882_v43 }
 0x70c   :  { %v883_v44 = vsel %vm2213_vm4, %v2211_v47, %v881_v42  ;;  %v1278_v42 = vstv %s1783_s28 }
 0x70d   :  { %1956 = vmatprep.mubr.msk.f32.mxu1 %vm67_vm0, %v883_v44  ;;  %v1063_v62 = vmul.f32 %v1062_v54, %v883_v44  ;;  %v1078_v14 = vmul.f32 %v1077_v2, %v883_v44 }
 0x70e   :  { %1957 = vmatmul.mubr.msk.f32.vlgmr.msra.gmra.mrb[8].mxu1 %vm67_vm0, %v882_v43 }
 0x70f   :  { %2053 = vmatpush3.bf16.msra.mxu1 %v2166_v5 }
 0x710   :  { %2055 = vmatprep.subr.bf16.mxu1 %v2180_v8 }
 0x713   :  { %2057 = vmatpush3.bf16.msra.mxu1 %v2180_v8 }
 0x714   :  { %1986 = vmatprep.subr.mxu1 %v2149_v0 }
 0x7e1   :  { %v1958_v46 = vpop.f32.mrb[8].mxu1 }
 0x7e2   :  { %v968_v49 = vadd.f32 %v1958_v46, %v1762_v45  ;;  %v962_v50 = vpop.f32.mrb[9].mxu1  ;;  %v1786_v46 = vld [vmem:[%s2392_s2 + $0x50] sm:$0xff] }
 0x7e3   :  { %v963_v51 = vadd.f32 %v1762_v45, %v962_v50  ;;  %v1286_v45 = vstv %s1785_s7 }
 0x7e4   :  { %v972_v53 = vmax.f32 %v968_v49, 0.0 }
 0x7e5   :  { %v971_v52 = vmax.f32 %v963_v51, 0.0  ;;  %v1787_v51 = vld [vmem:[%s2392_s2 + $0x58] sm:$0xff] }
 0x7e7   :  { %1967 = vmatprep.mubr.msk.f32.mxu1 %vm157_vm1, %v971_v52 }
 0x7e8   :  { %1968 = vmatmul.mubr.msk.f32.vlgmr.msra.gmra.mrb[10].mxu1 %vm157_vm1, %v972_v53 }
 0x7e9   :  { %1987 = vmatpush3.msra.mxu1 %v2149_v0 }
 0x7ea   :  { %2067 = vmatprep.subr.bf16.mxu1 %v2166_v5 }
 0x8bb   :  { %v1969_v55 = vpop.f32.mrb[10].mxu1 }
 0x8bc   :  { %v1051_v57 = vadd.f32 %v1969_v55, %v2195_v16  ;;  %v1045_v58 = vpop.f32.mrb[11].mxu1  ;;  %v1287_v55 = vmul.f32 %v1786_v46, %v1286_v45 }
 0x8bd   :  { %v1046_v59 = vadd.f32 %v2195_v16, %v1045_v58 }
 0x8be   :  { %v1067_v61 = vmul.f32 %v1065_v56, %v1051_v57  ;;  %v1288_v57 = vmul.f32 %v1787_v51, %v1286_v45  ;;  %v1677_v45 = vstv %s1810_s21 }
 0x8bf   :  { %v1066_v63 = vmul.f32 %v1065_v56, %v1046_v59 }
 0x8c0   :  { %v1069_v1 = vsub.f32 %v1064_v60, %v1067_v61 }
 0x8c1   :  { %v1068_v4 = vsub.f32 %v1063_v62, %v1066_v63  ;;  %v1790_v62 = vld [vmem:[%s2393_s3 + $0x6] ss:$0 sm:$0xff] }
 0x8c2   :  { %v1775_v6 = vclamps-f32 %v1069_v1, 0.99999 }
 0x8c3   :  { %v1774_v10 = vclamps-f32 %v1068_v4, 0.99999 }
 0x8c4   :  { %v1076_v13 = vmul.f32 %v1775_v6, %v1074_v3 }
 0x8c5   :  { %v1075_v15 = vmul.f32 %v1774_v10, %v1074_v3  ;;  %v1473_v10 = vstv %s1796_s0 }
 0x8c6   :  { %v1081_v18 = vadd.f32 %v1079_v11, %v1076_v13 }
 0x8c7   :  { %v1080_v20 = vadd.f32 %v1078_v14, %v1075_v15 }
 0x8c8   :  { %v1086_v22 = vadd.f32 %v1084_v19, %v1081_v18 }
 0x8c9   :  { %v1085_v21 = vadd.f32 %v1083_v17, %v1080_v20  ;;  %v1485_v20 = vstv %s1798_s13 }
 0x8ca   :  { %v1268_v37 = vmul.f32 %v1266_v31, %v1086_v22  ;;  %v1283_v50 = vmul.f32 %v1281_v41, %v1086_v22 }
 0x8cb   :  { %v1087_v23 = vsel %vm2213_vm4, %v2211_v47, %v1085_v21  ;;  %v1482_v21 = vstv %s1797_s14 }
 0x8cc   :  { %1972 = vmatprep.mubr.msk.f32.mxu0 %vm67_vm0, %v1087_v23  ;;  %v1267_v39 = vmul.f32 %v1266_v31, %v1087_v23  ;;  %v1282_v53 = vmul.f32 %v1281_v41, %v1087_v23 }
 0x8cd   :  { %1973 = vmatmul.mubr.msk.f32.vlgmr.msra.gmra.mrb[8].mxu0 %vm67_vm0, %v1086_v22 }
 0x8ce   :  { %2061 = vmatpush3.bf16.msra.mxu0 %v2166_v5 }
 0x8cf   :  { %2063 = vmatprep.subr.bf16.mxu0 %v2180_v8 }
 0x8d2   :  { %2065 = vmatpush3.bf16.msra.mxu0 %v2180_v8 }
 0x8d3   :  { %2002 = vmatprep.subr.mxu0 %v2149_v0 }
 0x9a0   :  { %v1974_v25 = vpop.f32.mrb[8].mxu0 }
 0x9a1   :  { %v1172_v26 = vadd.f32 %v1974_v25, %v1776_v24  ;;  %v1166_v27 = vpop.f32.mrb[9].mxu0  ;;  %v1800_v25 = vld [vmem:[%s2392_s2 + $0x60] sm:$0xff] }
 0x9a2   :  { %v1167_v28 = vadd.f32 %v1776_v24, %v1166_v27  ;;  %v1490_v24 = vstv %s1799_s15 }
 0x9a3   :  { %v1176_v30 = vmax.f32 %v1172_v26, 0.0 }
 0x9a4   :  { %v1175_v29 = vmax.f32 %v1167_v28, 0.0  ;;  %v1801_v28 = vld [vmem:[%s2392_s2 + $0x68] sm:$0xff] }
 0x9a6   :  { %1983 = vmatprep.mubr.msk.f32.mxu0 %vm157_vm1, %v1175_v29 }
 0x9a7   :  { %1984 = vmatmul.mubr.msk.f32.vlgmr.msra.gmra.mrb[10].mxu0 %vm157_vm1, %v1176_v30 }
 0x9a8   :  { %2003 = vmatpush3.msra.mxu0 %v2149_v0 }
 0x9a9   :  { %2075 = vmatprep.subr.bf16.mxu0 %v2166_v5 }
 0xa7a   :  { %v1985_v32 = vpop.f32.mrb[10].mxu0 }
 0xa7b   :  { %v1255_v34 = vadd.f32 %v1985_v32, %v2195_v16  ;;  %v1249_v35 = vpop.f32.mrb[11].mxu0  ;;  %v1491_v32 = vmul.f32 %v1800_v25, %v1490_v24 }
 0xa7c   :  { %v1250_v36 = vadd.f32 %v2195_v16, %v1249_v35 }
 0xa7d   :  { %v1271_v38 = vmul.f32 %v1269_v33, %v1255_v34  ;;  %v1492_v34 = vmul.f32 %v1801_v28, %v1490_v24 }
 0xa7e   :  { %v1270_v40 = vmul.f32 %v1269_v33, %v1250_v36 }
 0xa7f   :  { %v1273_v0 = vsub.f32 %v1268_v37, %v1271_v38 }
 0xa80   :  { %v1272_v43 = vsub.f32 %v1267_v39, %v1270_v40  ;;  %v1804_v39 = vld [vmem:[%s2393_s3 + $0x7] ss:$0 sm:$0xff] }
 0xa81   :  { %v1789_v44 = vclamps-f32 %v1273_v0, 0.99999 }
 0xa82   :  { %v1788_v49 = vclamps-f32 %v1272_v43, 0.99999 }
 0xa83   :  { %v1280_v52 = vmul.f32 %v1789_v44, %v1278_v42 }
 0xa84   :  { %v1279_v54 = vmul.f32 %v1788_v49, %v1278_v42 }
 0xa85   :  { %v1285_v56 = vadd.f32 %v1283_v50, %v1280_v52 }
 0xa86   :  { %v1284_v58 = vadd.f32 %v1282_v53, %v1279_v54 }
 0xa87   :  { %v1290_v60 = vadd.f32 %v1288_v57, %v1285_v56  ;;  %v1689_v56 = vstv %s1812_s22  ;;  %v1815_v57 = vld [vmem:[%s2392_s2 + $0x78] sm:$0xff] }
 0xa88   :  { %v1289_v59 = vadd.f32 %v1287_v55, %v1284_v58  ;;  %v1686_v58 = vstv %s1811_s6 }
 0xa89   :  { %v1472_v14 = vmul.f32 %v1470_v7, %v1290_v60  ;;  %v1487_v27 = vmul.f32 %v1485_v20, %v1290_v60 }
 0xa8a   :  { %v1291_v61 = vsel %vm2213_vm4, %v2211_v47, %v1289_v59  ;;  %v1694_v59 = vstv %s1813_s23 }
 0xa8b   :  { %1988 = vmatprep.mubr.msk.f32.mxu1 %vm67_vm0, %v1291_v61  ;;  %v1471_v17 = vmul.f32 %v1470_v7, %v1291_v61  ;;  %v1486_v30 = vmul.f32 %v1485_v20, %v1291_v61 }
 0xa8c   :  { %1989 = vmatmul.mubr.msk.f32.vlgmr.msra.gmra.mrb[12].mxu1 %vm67_vm0, %v1290_v60 }
 0xa8d   :  { %2069 = vmatpush3.bf16.msra.mxu1 %v2166_v5 }
 0xa8e   :  { %2071 = vmatprep.subr.bf16.mxu1 %v2180_v8 }
 0xa91   :  { %2073 = vmatpush3.bf16.msra.mxu1 %v2180_v8 }
 0xb5f   :  { %v1990_v63 = vpop.f32.mrb[12].mxu1 }
 0xb60   :  { %v1376_v1 = vadd.f32 %v1990_v63, %v1790_v62  ;;  %v1370_v2 = vpop.f32.mrb[13].mxu1 }
 0xb61   :  { %v1371_v3 = vadd.f32 %v1790_v62, %v1370_v2  ;;  %v1814_v62 = vld [vmem:[%s2392_s2 + $0x70] sm:$0xff]  ;;  %v1696_v2 = vmul.f32 %v1815_v57, %v1694_v59 }
 0xb62   :  { %v1380_v6 = vmax.f32 %v1376_v1, 0.0 }
 0xb63   :  { %v1379_v4 = vmax.f32 %v1371_v3, 0.0 }
 0xb65   :  { %1999 = vmatprep.mubr.msk.f32.mxu1 %vm157_vm1, %v1379_v4 }
 0xb66   :  { %2000 = vmatmul.mubr.msk.f32.vlgmr.msra.gmra.mrb[14].mxu1 %vm157_vm1, %v1380_v6  ;;  %v1695_v6 = vmul.f32 %v1814_v62, %v1694_v59 }
 0xc39   :  { %v2001_v9 = vpop.f32.mrb[14].mxu1 }
 0xc3a   :  { %v1459_v11 = vadd.f32 %v2001_v9, %v2195_v16  ;;  %v1453_v12 = vpop.f32.mrb[15].mxu1 }
 0xc3b   :  { %v1454_v13 = vadd.f32 %v2195_v16, %v1453_v12 }
 0xc3c   :  { %v1475_v15 = vmul.f32 %v1473_v10, %v1459_v11 }
 0xc3d   :  { %v1474_v18 = vmul.f32 %v1473_v10, %v1454_v13 }
 0xc3e   :  { %v1477_v19 = vsub.f32 %v1472_v14, %v1475_v15 }
 0xc3f   :  { %v1476_v22 = vsub.f32 %v1471_v17, %v1474_v18 }
 0xc40   :  { %v1803_v23 = vclamps-f32 %v1477_v19, 0.99999 }
 0xc41   :  { %v1802_v26 = vclamps-f32 %v1476_v22, 0.99999 }
 0xc42   :  { %v1484_v29 = vmul.f32 %v1803_v23, %v1482_v21 }
 0xc43   :  { %v1483_v31 = vmul.f32 %v1802_v26, %v1482_v21 }
 0xc44   :  { %v1489_v33 = vadd.f32 %v1487_v27, %v1484_v29 }
 0xc45   :  { %v1488_v35 = vadd.f32 %v1486_v30, %v1483_v31 }
 0xc46   :  { %v1494_v37 = vadd.f32 %v1492_v34, %v1489_v33 }
 0xc47   :  { %v1493_v36 = vadd.f32 %v1491_v32, %v1488_v35 }
 0xc49   :  { %v1495_v38 = vsel %vm2213_vm4, %v2211_v47, %v1493_v36 }
 0xc4a   :  { %2004 = vmatprep.mubr.msk.f32.mxu0 %vm67_vm0, %v1495_v38  ;;  %v1690_v3 = vmul.f32 %v1689_v56, %v1495_v38 }
 0xc4b   :  { %2005 = vmatmul.mubr.msk.f32.vlgmr.msra.gmra.mrb[12].mxu0 %vm67_vm0, %v1494_v37 }
 0xc4c   :  { %2077 = vmatpush3.bf16.msra.mxu0 %v2166_v5  ;;  %v1674_v5 = vstv %s1809_s20 }
 0xc4d   :  { %2079 = vmatprep.subr.bf16.mxu0 %v2180_v8  ;;  %v1676_v51 = vmul.f32 %v1674_v5, %v1494_v37  ;;  %v1675_v53 = vmul.f32 %v1674_v5, %v1495_v38 }
 0xc50   :  { %2081 = vmatpush3.bf16.msra.mxu0 %v2180_v8 }
 0xd1e   :  { %v2006_v40 = vpop.f32.mrb[12].mxu0 }
 0xd1f   :  { %v1580_v0 = vadd.f32 %v2006_v40, %v1804_v39  ;;  %v1574_v41 = vpop.f32.mrb[13].mxu0 }
 0xd20   :  { %v1575_v42 = vadd.f32 %v1804_v39, %v1574_v41 }
 0xd21   :  { %v1584_v44 = vmax.f32 %v1580_v0, 0.0 }
 0xd22   :  { %v1583_v43 = vmax.f32 %v1575_v42, 0.0 }
 0xd24   :  { %2015 = vmatprep.mubr.msk.f32.mxu0 %vm157_vm1, %v1583_v43 }
 0xd25   :  { %2016 = vmatmul.mubr.msk.f32.vlgmr.msra.gmra.mrb[14].mxu0 %vm157_vm1, %v1584_v44 }
 0xdf8   :  { %v2017_v8 = vpop.f32.mrb[14].mxu0 }
 0xdf9   :  { %v1663_v46 = vadd.f32 %v2017_v8, %v2195_v16  ;;  %v1657_v49 = vpop.f32.mrb[15].mxu0 }
 0xdfa   :  { %v1658_v50 = vadd.f32 %v2195_v16, %v1657_v49  ;;  %v1691_v16 = vmul.f32 %v1689_v56, %v1494_v37 }
 0xdfb   :  { %v1679_v52 = vmul.f32 %v1677_v45, %v1663_v46 }
 0xdfc   :  { %v1678_v54 = vmul.f32 %v1677_v45, %v1658_v50 }
 0xdfd   :  { %v1681_v55 = vsub.f32 %v1676_v51, %v1679_v52 }
 0xdfe   :  { %v1680_v60 = vsub.f32 %v1675_v53, %v1678_v54 }
 0xdff   :  { %v1817_v61 = vclamps-f32 %v1681_v55, 0.99999 }
 0xe00   :  { %v1816_v63 = vclamps-f32 %v1680_v60, 0.99999 }
 0xe01   :  { %v1688_v1 = vmul.f32 %v1817_v61, %v1686_v58 }
 0xe02   :  { %v1687_v4 = vmul.f32 %v1816_v63, %v1686_v58 }
 0xe03   :  { %v1693_v7 = vadd.f32 %v1691_v16, %v1688_v1 }
 0xe04   :  { %v1692_v9 = vadd.f32 %v1690_v3, %v1687_v4 }
 0xe05   :  { %v1698_v10 = vadd.f32 %v1696_v2, %v1693_v7 }
 0xe06   :  { %v1697_v11 = vadd.f32 %v1695_v6, %v1692_v9 }
 0xe07   :  { %1702 = vst.msk [vmem:[%s2398_s8 + $0x8] sm:$0xff] %vm67_vm0, %v1698_v10 }
 0xe08   :  { %v1699_v12 = vsel %vm2213_vm4, %v2211_v47, %v1697_v11 }
 0xe09   :  { %1701 = vst.msk [vmem:[%s2398_s8] sm:$0xff] %vm67_vm0, %v1699_v12 }
 0xe0a   :  { %1707 = vsyncpa [#allocation3], 1 }

</bundles_post_ra>
